<compile_context>
chip_gen: v7x
topology: tpu7x:2x2x1
jax: 0.10.0
libtpu: 0.0.40
codegen_flags: <defaults>
</compile_context>

<pallas_src>
import functools

import numpy as np
import jax
import jax.numpy as jnp
from jax import lax
from jax.experimental import pallas as pl
from jax.experimental.pallas import tpu as pltpu


def _round_up(x, m):
    return ((x + m - 1) // m) * m


def _segment_mean_kernel(jlo_ref, jhi_ref, idx_ref, fhi_ref, flo_ref, inv_ref,
                         out_ref, acc_ref, *, tm):
    i = pl.program_id(0)   # output-segment tile (parallel)
    j = pl.program_id(1)   # position inside this tile's input span (reduction)

    @pl.when(j == 0)
    def _():
        acc_ref[...] = jnp.zeros_like(acc_ref)

    # j walks [jlo[i], jhi[i]].  Steps past the span are clamped by the
    # index_map (repeated block index -> copy skipped) and skipped here.
    active = (jlo_ref[i] + j) <= jhi_ref[i]

    @pl.when(active)
    def _():
        idx_col = idx_ref[...]                                   # (TN, 1) int32
        tn = idx_col.shape[0]
        rel = idx_col - i * tm                                   # (TN, 1): cheap offset
        base = lax.broadcasted_iota(jnp.int32, (tn, tm), 1)      # constant (TN, TM)
        onehot = (rel == base).astype(jnp.bfloat16)              # exact 0/1 in bf16

        # bf16x2 split: acc[m, c] += sum_n onehot[n, m] * (hi + lo)[n, c]  (MXU)
        contrib = lax.dot_general(
            onehot, fhi_ref[...], (((0,), (0,)), ((), ())),
            preferred_element_type=jnp.float32)
        contrib += lax.dot_general(
            onehot, flo_ref[...], (((0,), (0,)), ((), ())),
            preferred_element_type=jnp.float32)
        acc_ref[...] += contrib

    @pl.when(j == pl.num_programs(1) - 1)
    def _():
        # inv_ref holds 1/(count + 1): include_self=True semantics, host-exact.
        out_ref[...] = (acc_ref[...] * inv_ref[...]).astype(out_ref.dtype)


def segment_mean_pallas(feats, idx, num_segments, *, tm=128, tn=512):
    """Mean-pool feats (N, C) into (num_segments, C) by segment ids idx (N,).

    Reproduces torch.scatter_reduce(reduce='mean', include_self=True):
    denominator is (count + 1).
    """
    idx = np.asarray(idx, dtype=np.int64)
    N, C = feats.shape
    M = int(num_segments)

    tn = max(_round_up(tn, 16), 16)          # bf16 sublane packing
    tm = max(_round_up(tm, 8), 8)
    # v7x megacore: keep at least 2 output tiles on the "parallel" axis when M allows.
    if M > 16 and M <= tm:
        tm = max(8, _round_up(-(-M // 2), 8))

    n_pad = _round_up(max(N, 1), tn)
    m_pad = _round_up(max(M, 1), tm)
    n_tiles = n_pad // tn
    m_tiles = m_pad // tm

    # --- host-side schedule: sort rows by segment id, per-output-tile spans ----
    order = np.argsort(idx, kind="stable")
    idx_sorted = idx[order]

    # Padded rows get sentinel id m_pad: m_pad is a multiple of tm, so
    # (sentinel - i*tm) >= tm for every tile i -> never matches a one-hot lane.
    idx_p = np.full((n_pad,), m_pad, dtype=np.int32)
    idx_p[:N] = idx_sorted

    # Rows contributing to output tile i are contiguous (sorted); convert the
    # row range to an input-tile range [jlo, jhi].
    seg_lo = np.arange(m_tiles, dtype=np.int64) * tm
    row_lo = np.searchsorted(idx_sorted, seg_lo, side="left")
    row_hi = np.searchsorted(idx_sorted, seg_lo + tm, side="left")
    has = row_hi > row_lo
    jlo = np.where(has, row_lo // tn, 0).astype(np.int32)
    jhi = np.where(has, (row_hi - 1) // tn, -1).astype(np.int32)
    span = np.where(has, jhi - jlo + 1, 0)
    max_span = max(int(span.max()), 1)

    # Host-precomputed 1/(count + 1): no in-kernel divide, exact reciprocal.
    cnt = np.bincount(idx, minlength=M).astype(np.float64)
    inv = np.ones((m_pad, 1), dtype=np.float32)
    inv[:M, 0] = (1.0 / (cnt + 1.0)).astype(np.float32)

    # --- device-side inputs: sorted feats split into bf16 hi/lo ----------------
    order_dev = jnp.asarray(order, jnp.int32)
    f32 = jnp.take(feats, order_dev, axis=0).astype(jnp.float32)
    f_hi = f32.astype(jnp.bfloat16)
    f_lo = (f32 - f_hi.astype(jnp.float32)).astype(jnp.bfloat16)
    pad_n = n_pad - N
    f_hi = jnp.pad(f_hi, ((0, pad_n), (0, 0)))
    f_lo = jnp.pad(f_lo, ((0, pad_n), (0, 0)))
    idx_dev = jnp.asarray(idx_p.reshape(n_pad, 1))
    inv_dev = jnp.asarray(inv)

    def in_row_map(i, j, jlo_ref, jhi_ref):
        jc = jnp.minimum(jlo_ref[i] + j, jhi_ref[i])
        return (jnp.maximum(jc, 0), 0)

    def out_row_map(i, j, jlo_ref, jhi_ref):
        return (i, 0)

    grid = (m_tiles, max_span)
    out = pl.pallas_call(
        functools.partial(_segment_mean_kernel, tm=tm),
        out_shape=jax.ShapeDtypeStruct((m_pad, C), feats.dtype),
        grid_spec=pltpu.PrefetchScalarGridSpec(
            num_scalar_prefetch=2,
            grid=grid,
            in_specs=[
                pl.BlockSpec((tn, 1), in_row_map),      # segment ids
                pl.BlockSpec((tn, C), in_row_map),      # feats hi (bf16)
                pl.BlockSpec((tn, C), in_row_map),      # feats lo (bf16)
                pl.BlockSpec((tm, 1), out_row_map),     # 1/(count + 1)
            ],
            out_specs=pl.BlockSpec((tm, C), out_row_map),
            scratch_shapes=[pltpu.VMEM((tm, C), jnp.float32)],
        ),
        compiler_params=pltpu.CompilerParams(
            dimension_semantics=("parallel", "arbitrary")),
    )(jnp.asarray(jlo), jnp.asarray(jhi), idx_dev, f_hi, f_lo, inv_dev)
    return out[:M]


def sparse_downsample(feats, coords, factor, mode="mean", *, tm=128, tn=512):
    """Forward pass of SparseDownsample.

    feats:  (N, C) jnp array
    coords: (N, 1+DIM) int array, columns [batch, x, y, z]
    Returns (new_feats, new_coords, idx).
    """
    assert mode == "mean"
    # TODO(synk): coordinate hashing / unique stays on host (output size M is
    # data-dependent and needed as a static shape for the Pallas output).
    coords_np = np.asarray(coords)
    DIM = coords_np.shape[-1] - 1
    factor = tuple(factor) if isinstance(factor, (list, tuple)) else (factor,) * DIM
    assert DIM == len(factor)

    coord = [coords_np[:, 0].astype(np.int64)] + [
        coords_np[:, i + 1].astype(np.int64) // factor[i] for i in range(DIM)
    ]
    MAX = [int(coord[i + 1].max()) + 1 for i in range(DIM)]
    OFFSET = np.cumprod(np.array(MAX[::-1], dtype=np.int64))[::-1].tolist() + [1]
    code = sum(c * o for c, o in zip(coord, OFFSET))
    uniq, idx = np.unique(code, return_inverse=True)   # sorted uniques + inverse map
    M = int(uniq.shape[0])

    new_feats = segment_mean_pallas(feats, idx, M, tm=tm, tn=tn)

    new_coords = np.stack(
        [uniq // OFFSET[0]]
        + [(uniq // OFFSET[i + 1]) % MAX[i] for i in range(DIM)],
        axis=-1,
    ).astype(coords_np.dtype)
    return new_feats, jnp.asarray(new_coords), jnp.asarray(idx, jnp.int32)


if __name__ == "__main__":
    key = jax.random.PRNGKey(0)
    k_b, k_xyz, k_f = jax.random.split(key, 3)

    N, C, S, B = 512, 32, 16, 2          # voxels, channels, spatial extent, batch
    factor = (2, 2, 2)

    batch = jax.random.randint(k_b, (N, 1), 0, B, dtype=jnp.int32)
    xyz = jax.random.randint(k_xyz, (N, 3), 0, S, dtype=jnp.int32)
    coords = jnp.concatenate([batch, xyz], axis=-1)          # (N, 4)
    feats = jax.random.normal(k_f, (N, C), dtype=jnp.float32)

    # Small tiles here so the multi-tile span/skip path is exercised.
    new_feats, new_coords, idx = sparse_downsample(feats, coords, factor, tm=128, tn=128)
    new_feats = jax.block_until_ready(new_feats)

    # numpy reference reproducing torch.scatter_reduce(reduce='mean', include_self=True)
    idx_np = np.asarray(idx)
    feats_np = np.asarray(feats, dtype=np.float64)
    M = int(new_coords.shape[0])
    ref = np.zeros((M, C), dtype=np.float64)
    cnt = np.zeros((M,), dtype=np.float64)
    np.add.at(ref, idx_np, feats_np)
    np.add.at(cnt, idx_np, 1.0)
    ref = (ref / (cnt + 1.0)[:, None]).astype(np.float32)

    assert new_feats.shape == (M, C)
    assert new_coords.shape == (M, 4)
    np.testing.assert_allclose(np.asarray(new_feats), ref, rtol=1e-5, atol=1e-5)

    print("KERNEL_OK")
</pallas_src>

<mosaic_0001>
module attributes {stable_mosaic.version = 11 : i64} {
  func.func @_segment_mean_kernel(%arg0: i32, %arg1: i32, %arg2: memref<4xi32, #tpu.memory_space<smem>>, %arg3: memref<4xi32, #tpu.memory_space<smem>>, %arg4: memref<128x1xi32, #tpu.memory_space<vmem>>, %arg5: memref<128x32xbf16, #tpu.memory_space<vmem>>, %arg6: memref<128x32xbf16, #tpu.memory_space<vmem>>, %arg7: memref<128x1xf32, #tpu.memory_space<vmem>>, %arg8: memref<128x32xf32, #tpu.memory_space<vmem>>, %arg9: memref<128x32xf32, #tpu.memory_space<vmem>>) attributes {dimension_semantics = [#tpu.dimension_semantics<parallel>, #tpu.dimension_semantics<arbitrary>], iteration_bounds = array<i64: 4, 2>, scalar_prefetch = 2 : i64, scratch_operands = 1 : i64, tpu.core_type = #tpu.core_type<tc>, window_params = [{transform_indices = @transform_0, window_bounds = array<i64: 128, 1>}, {transform_indices = @transform_1, window_bounds = array<i64: 128, 32>}, {transform_indices = @transform_2, window_bounds = array<i64: 128, 32>}, {transform_indices = @transform_3, window_bounds = array<i64: 128, 1>}, {transform_indices = @transform_4, window_bounds = array<i64: 128, 32>}]} {
    %c0_i32 = arith.constant 0 : i32
    %0 = arith.cmpi eq, %arg1, %c0_i32 : i32
    %1 = arith.extui %0 : i1 to i32
    %c0_i32_0 = arith.constant 0 : i32
    %2 = arith.cmpi ne, %1, %c0_i32_0 : i32
    scf.if %2 {
      %cst = arith.constant 0.000000e+00 : f32
      %14 = vector.broadcast %cst : f32 to vector<128x32xf32>
      %c0 = arith.constant 0 : index
      %c0_3 = arith.constant 0 : index
      %15 = vector.load %arg9[%c0, %c0_3] : memref<128x32xf32, #tpu.memory_space<vmem>>, vector<128x32xf32>
      tpu.vector_store %arg9[%c0, %c0_3], %14 {strides = array<i32>} : memref<128x32xf32, #tpu.memory_space<vmem>>, vector<128x32xf32>,
    } else {
    }
    %3 = arith.index_cast %arg0 : i32 to index
    %4 = memref.load %arg2[%3] : memref<4xi32, #tpu.memory_space<smem>>
    %5 = arith.addi %4, %arg1 : i32
    %6 = arith.index_cast %arg0 : i32 to index
    %7 = memref.load %arg3[%6] : memref<4xi32, #tpu.memory_space<smem>>
    %8 = arith.cmpi sle, %5, %7 : i32
    %9 = arith.extui %8 : i1 to i32
    %c0_i32_1 = arith.constant 0 : i32
    %10 = arith.cmpi ne, %9, %c0_i32_1 : i32
    scf.if %10 {
      %c0 = arith.constant 0 : index
      %c0_3 = arith.constant 0 : index
      %14 = vector.load %arg4[%c0, %c0_3] : memref<128x1xi32, #tpu.memory_space<vmem>>, vector<128x1xi32>
      %c128_i32 = arith.constant 128 : i32
      %15 = arith.muli %arg0, %c128_i32 : i32
      %16 = vector.broadcast %15 : i32 to vector<128x1xi32>
      %17 = arith.subi %14, %16 : vector<128x1xi32>
      %18 = tpu.iota {dimensions = array<i32: 1>} : vector<128x128xi32>
      %19 = vector.broadcast %17 : vector<128x1xi32> to vector<128x128xi32>
      %20 = arith.cmpi eq, %19, %18 : vector<128x128xi32>
      %21 = arith.extui %20 : vector<128x128xi1> to vector<128x128xi32>
      %22 = arith.sitofp %21 : vector<128x128xi32> to vector<128x128xf32>
      %23 = arith.truncf %22 : vector<128x128xf32> to vector<128x128xbf16>
      %c0_4 = arith.constant 0 : index
      %c0_5 = arith.constant 0 : index
      %24 = vector.load %arg5[%c0_4, %c0_5] : memref<128x32xbf16, #tpu.memory_space<vmem>>, vector<128x32xbf16>
      %cst = arith.constant dense<0.000000e+00> : vector<128x32xf32>
      %25 = tpu.matmul %23, %24, %cst {dimension_numbers = #tpu.dot_dimension_numbers<[0], [0], [1], [1], [0, 1, 1, 1], [], []>} : vector<128x128xbf16>, vector<128x32xbf16>, vector<128x32xf32> -> vector<128x32xf32>
      %c0_6 = arith.constant 0 : index
      %c0_7 = arith.constant 0 : index
      %26 = vector.load %arg6[%c0_6, %c0_7] : memref<128x32xbf16, #tpu.memory_space<vmem>>, vector<128x32xbf16>
      %cst_8 = arith.constant dense<0.000000e+00> : vector<128x32xf32>
      %27 = tpu.matmul %23, %26, %cst_8 {dimension_numbers = #tpu.dot_dimension_numbers<[0], [0], [1], [1], [0, 1, 1, 1], [], []>} : vector<128x128xbf16>, vector<128x32xbf16>, vector<128x32xf32> -> vector<128x32xf32>
      %28 = arith.addf %25, %27 : vector<128x32xf32>
      %c0_9 = arith.constant 0 : index
      %c0_10 = arith.constant 0 : index
      %29 = vector.load %arg9[%c0_9, %c0_10] : memref<128x32xf32, #tpu.memory_space<vmem>>, vector<128x32xf32>
      %30 = arith.addf %29, %28 : vector<128x32xf32>
      %c0_11 = arith.constant 0 : index
      %c0_12 = arith.constant 0 : index
      %31 = vector.load %arg9[%c0_11, %c0_12] : memref<128x32xf32, #tpu.memory_space<vmem>>, vector<128x32xf32>
      tpu.vector_store %arg9[%c0_11, %c0_12], %30 {strides = array<i32>} : memref<128x32xf32, #tpu.memory_space<vmem>>, vector<128x32xf32>,
    } else {
    }
    %c1_i32 = arith.constant 1 : i32
    %11 = arith.cmpi eq, %arg1, %c1_i32 : i32
    %12 = arith.extui %11 : i1 to i32
    %c0_i32_2 = arith.constant 0 : i32
    %13 = arith.cmpi ne, %12, %c0_i32_2 : i32
    scf.if %13 {
      %c0 = arith.constant 0 : index
      %c0_3 = arith.constant 0 : index
      %14 = vector.load %arg9[%c0, %c0_3] : memref<128x32xf32, #tpu.memory_space<vmem>>, vector<128x32xf32>
      %c0_4 = arith.constant 0 : index
      %c0_5 = arith.constant 0 : index
      %15 = vector.load %arg7[%c0_4, %c0_5] : memref<128x1xf32, #tpu.memory_space<vmem>>, vector<128x1xf32>
      %16 = vector.broadcast %15 : vector<128x1xf32> to vector<128x32xf32>
      %17 = arith.mulf %14, %16 : vector<128x32xf32>
      %c0_6 = arith.constant 0 : index
      %c0_7 = arith.constant 0 : index
      %18 = vector.load %arg8[%c0_6, %c0_7] : memref<128x32xf32, #tpu.memory_space<vmem>>, vector<128x32xf32>
      tpu.vector_store %arg8[%c0_6, %c0_7], %17 {strides = array<i32>} : memref<128x32xf32, #tpu.memory_space<vmem>>, vector<128x32xf32>,
    } else {
    }
    return
  }
  func.func @transform_0(%arg0: i32, %arg1: i32, %arg2: memref<4xi32, #tpu.memory_space<smem>>, %arg3: memref<4xi32, #tpu.memory_space<smem>>) -> (i32, i32) {
    %0 = arith.index_cast %arg0 : i32 to index
    %1 = memref.load %arg2[%0] : memref<4xi32, #tpu.memory_space<smem>>
    %2 = arith.addi %1, %arg1 : i32
    %3 = arith.index_cast %arg0 : i32 to index
    %4 = memref.load %arg3[%3] : memref<4xi32, #tpu.memory_space<smem>>
    %5 = arith.minsi %2, %4 : i32
    %c0_i32 = arith.constant 0 : i32
    %6 = arith.maxsi %5, %c0_i32 : i32
    %c0_i32_0 = arith.constant 0 : i32
    %c0_i32_1 = arith.constant 0 : i32
    return %6, %c0_i32_0 : i32, i32
  }
  func.func @transform_1(%arg0: i32, %arg1: i32, %arg2: memref<4xi32, #tpu.memory_space<smem>>, %arg3: memref<4xi32, #tpu.memory_space<smem>>) -> (i32, i32) {
    %0 = arith.index_cast %arg0 : i32 to index
    %1 = memref.load %arg2[%0] : memref<4xi32, #tpu.memory_space<smem>>
    %2 = arith.addi %1, %arg1 : i32
    %3 = arith.index_cast %arg0 : i32 to index
    %4 = memref.load %arg3[%3] : memref<4xi32, #tpu.memory_space<smem>>
    %5 = arith.minsi %2, %4 : i32
    %c0_i32 = arith.constant 0 : i32
    %6 = arith.maxsi %5, %c0_i32 : i32
    %c0_i32_0 = arith.constant 0 : i32
    %c0_i32_1 = arith.constant 0 : i32
    return %6, %c0_i32_0 : i32, i32
  }
  func.func @transform_2(%arg0: i32, %arg1: i32, %arg2: memref<4xi32, #tpu.memory_space<smem>>, %arg3: memref<4xi32, #tpu.memory_space<smem>>) -> (i32, i32) {
    %0 = arith.index_cast %arg0 : i32 to index
    %1 = memref.load %arg2[%0] : memref<4xi32, #tpu.memory_space<smem>>
    %2 = arith.addi %1, %arg1 : i32
    %3 = arith.index_cast %arg0 : i32 to index
    %4 = memref.load %arg3[%3] : memref<4xi32, #tpu.memory_space<smem>>
    %5 = arith.minsi %2, %4 : i32
    %c0_i32 = arith.constant 0 : i32
    %6 = arith.maxsi %5, %c0_i32 : i32
    %c0_i32_0 = arith.constant 0 : i32
    %c0_i32_1 = arith.constant 0 : i32
    return %6, %c0_i32_0 : i32, i32
  }
  func.func @transform_3(%arg0: i32, %arg1: i32, %arg2: memref<4xi32, #tpu.memory_space<smem>>, %arg3: memref<4xi32, #tpu.memory_space<smem>>) -> (i32, i32) {
    %c0_i32 = arith.constant 0 : i32
    %c0_i32_0 = arith.constant 0 : i32
    return %arg0, %c0_i32 : i32, i32
  }
  func.func @transform_4(%arg0: i32, %arg1: i32, %arg2: memref<4xi32, #tpu.memory_space<smem>>, %arg3: memref<4xi32, #tpu.memory_space<smem>>) -> (i32, i32) {
    %c0_i32 = arith.constant 0 : i32
    %c0_i32_0 = arith.constant 0 : i32
    return %arg0, %c0_i32 : i32, i32
  }
}

</mosaic_0001>

<bundles_post_ra>
// kernel: tpu_custom_call.1
= control target key start
LH: loop header
LB: loop body
LE: loop exit
PB: predicated region body
PF: predicated region fallthrough
CT: control target
= control target key end

     0   :  { %s1811_s0 = inlined_call_operand.vmem [shape: s32[4], index: 0, kind: input, shape index: {}]   ;;  %s1812_s2 = inlined_call_operand.vmem [shape: s32[512,1], index: 2, kind: input, shape index: {}]   ;;  %s1813_s3 = inlined_call_operand.vmem [shape: bf16[512,32], index: 3, kind: input, shape index: {}]   ;;  %s1814_s4 = inlined_call_operand.vmem [shape: bf16[512,32], index: 4, kind: input, shape index: {}]   ;;  %s1815_s5 = inlined_call_operand.vmem [shape: f32[512,1], index: 5, kind: input, shape index: {}]   ;;  %s1816_s6 = inlined_call_operand.vmem [shape: f32[512,32], index: 6, kind: output, shape index: {}]   ;;  %s1817_s1 = inlined_call_operand.vmem [shape: s32[4], index: 1, kind: input, shape index: {}]  }
   0x1   :  { %s11_s23 = sshll.u32 %s1811_s0, 4  ;;  %s15_s26 = sshll.u32 %s1817_s1, 4  ;;  %s12_s23 = int_to_ptr.vmem [resolvable:$true] %s11_s23  ;;  %s16_s26 = int_to_ptr.vmem [resolvable:$true] %s15_s26 }
   0x2   :  { %s1478_s27 = scalar_lea.vmem %s12_s23, 16  ;;  %p1483_p1 = scmp.lt.s32.totalorder %s12_s23, %s12_s23 }
   0x3   :  { %p1479_p0 = scmp.ne.s32.totalorder %s12_s23, %s1478_s27  ;;  %p1484_p2 = scmp.lt.s32.totalorder %s1478_s27, %s1478_s27 }
   0x5   :  { %p1485_p3 = por %p1484_p2, %p1483_p1 }
   0x7   :  { %p1486_p4 = pnand %p1485_p3, %p1479_p0 }
   0x9   :  { %1489 = shalt.err (!%p1486_p4)  }
   0xa   :  { %s1544_s28 = smov [#allocation4]   ;;  %s1490_s29 = scalar_lea.vmem %s16_s26, 16 }
   0xb   :  { %14 = dma.vmem_to_smem %s12_s23, 16, %s1544_s28, [#allocation3] }
   0xc   :  { %p1491_p5 = scmp.ne.s32.totalorder %s16_s26, %s1490_s29  ;;  %p1495_p6 = scmp.lt.s32.totalorder %s16_s26, %s16_s26 }
   0xd   :  { %p1496_p7 = scmp.lt.s32.totalorder %s1490_s29, %s1490_s29 }
   0xf   :  { %p1497_p8 = por %p1496_p7, %p1495_p6 }
  0x11   :  { %p1498_p9 = pnand %p1497_p8, %p1491_p5 }
  0x13   :  { %1501 = shalt.err (!%p1498_p9)  }
  0x14   :  { %s1545_s0 = smov [#allocation5]  }
  0x15   :  { %18 = dma.vmem_to_smem %s16_s26, 16, %s1545_s0, [#allocation3] }
  0x16   :  { %1522 = dma.done.wait [#allocation3], 32 }
  0x17   :  { %1523 = vsyncadd [#allocation3], 4294967264 }
  0x18   :  { %20 = sfence }
  0x19   :  { %s1591_s1 = smov 0   ;;  %s1593_s30 = smov 0  }
  0x1a   :  { %s1595_s7 = smov 0   ;;  %s1597_s8 = smov 0  }
  0x1b   :  { %s1599_s9 = smov 0  }
  0x1c LB: > { %s35_s10 = sadd.s32 1, %s1534_s7  ;;  %s38_s11 = sadd.s32 1, %s1538_s8  ;;  %s1542_s9 = sphi %s1599_s9, %s26_s9   ;;  %s1538_s8 = sphi %s1597_s8, %s1821_s8   ;;  %s1534_s7 = sphi %s1595_s7, %s1820_s7   ;;  %s1530_s30 = sphi %s1593_s30, %s1819_s30   ;;  %s1526_s1 = sphi %s1591_s1, %s1818_s1  }
  0x1d   : > { %p36_p10 = scmp.ge.s32.totalorder %s35_s10, 2  ;;  %p1251_p11 = scmp.ge.s32.totalorder %s1542_s9, 1 }
  0x1e   : > { %p304_p12 = scmp.lt.s32.totalorder %s1542_s9, 9 }
  0x1f   : > { %s1823_s10 = smov (%p36_p10, %s35_s10), 0  ;;  %s1825_s11 = smov (!%p36_p10, %s38_s11), %s1538_s8 }
  0x20   : > { %p305_p13 = pnand %p1251_p11, %p304_p12  ;;  %p40_p0 = scmp.ge.s32.totalorder %s1825_s11, 4 }
  0x21   : > { %s366_s12 = sld [smem:[#allocation4 + %s1530_s30]] (!%p305_p13)  ;;  %s1258_s22 = sshll.u32 (!%p305_p13), %s1530_s30, 4 }
  0x22   : > { %s1827_s11 = smov (%p40_p0, %s1825_s11), 0  ;;  %308 = sbr.rel (%p305_p13) target bundleno = 724 (0x2d4), region = 36 }
  0x23   : > { %s368_s13 = sld [smem:[#allocation5 + %s1530_s30]] (!%p305_p13)  ;;  %p427_p8 = scmp.lt.s32.totalorder (!%p305_p13), %s1258_s22, 63 }
  0x24   : > { %s386_s14 = sld [smem:[#allocation4 + %s1530_s30]] (!%p305_p13)  ;;  %p1262_p11 = scmp.ne.s32.totalorder (!%p305_p13), %s1526_s1, 0 }
  0x25   : > { %s388_s15 = sld [smem:[#allocation5 + %s1530_s30]] (!%p305_p13) }
  0x26   : > { %s406_s16 = sld [smem:[#allocation4 + %s1530_s30]] (!%p305_p13) }
  0x27   : > { %s367_s17 = sadd.s32 (!%p305_p13), %s1526_s1, %s366_s12  ;;  %s408_s19 = sld [smem:[#allocation5 + %s1530_s30]] (!%p305_p13) }
  0x29   : > { %p369_p1 = scmp.lt.s32.totalorder %s367_s17, %s368_s13  ;;  %s1843_s22 = smov (!%p427_p8, %s1258_s22), 63  ;;  %vm443_vm0 = vcmask (!%p1262_p11), 261120   ;;  %v1546_v0 = vmov (!%p1262_p11), 0.0  }
  0x2a   : > { %s387_s18 = sadd.s32 %s1526_s1, %s386_s14  ;;  %444 = vst.msk [vmem:[#allocation2] sm:$0xff] (!%p1262_p11), %vm443_vm0, %v1546_v0  ;;  %445 = vst.msk [vmem:[#allocation2 + $0x8] sm:$0xff] (!%p1262_p11), %vm443_vm0, %v1546_v0 }
  0x2b   : > { %p389_p2 = scmp.lt.s32.totalorder %s387_s18, %s388_s15  ;;  %s1829_s17 = smov (!%p369_p1, %s367_s17), %s368_s13  ;;  %446 = vst.msk [vmem:[#allocation2 + $0x10] sm:$0xff] (!%p1262_p11), %vm443_vm0, %v1546_v0  ;;  %447 = vst.msk [vmem:[#allocation2 + $0x18] sm:$0xff] (!%p1262_p11), %vm443_vm0, %v1546_v0 }
  0x2c   : > { %p371_p3 = scmp.gt.s32.totalorder %s1829_s17, 0  ;;  %s407_s20 = sadd.s32 %s1526_s1, %s406_s16  ;;  %448 = vst.msk [vmem:[#allocation2 + $0x20] sm:$0xff] (!%p1262_p11), %vm443_vm0, %v1546_v0  ;;  %449 = vst.msk [vmem:[#allocation2 + $0x28] sm:$0xff] (!%p1262_p11), %vm443_vm0, %v1546_v0 }
  0x2d   : > { %s1831_s18 = smov (!%p389_p2, %s387_s18), %s388_s15  ;;  %p409_p7 = scmp.lt.s32.totalorder %s407_s20, %s408_s19  ;;  %450 = vst.msk [vmem:[#allocation2 + $0x30] sm:$0xff] (!%p1262_p11), %vm443_vm0, %v1546_v0  ;;  %451 = vst.msk [vmem:[#allocation2 + $0x38] sm:$0xff] (!%p1262_p11), %vm443_vm0, %v1546_v0 }
  0x2e   : > { %p391_p4 = scmp.gt.s32.totalorder %s1831_s18, 0  ;;  %s1833_s17 = smov (!%p371_p3, %s1829_s17), 0  ;;  %452 = vst.msk [vmem:[#allocation2 + $0x40] sm:$0xff] (!%p1262_p11), %vm443_vm0, %v1546_v0  ;;  %453 = vst.msk [vmem:[#allocation2 + $0x48] sm:$0xff] (!%p1262_p11), %vm443_vm0, %v1546_v0 }
  0x2f   : > { %s1252_s21 = sshll.u32 %s1833_s17, 4  ;;  %s1841_s20 = smov (!%p409_p7, %s407_s20), %s408_s19  ;;  %454 = vst.msk [vmem:[#allocation2 + $0x50] sm:$0xff] (!%p1262_p11), %vm443_vm0, %v1546_v0  ;;  %455 = vst.msk [vmem:[#allocation2 + $0x58] sm:$0xff] (!%p1262_p11), %vm443_vm0, %v1546_v0 }
  0x30   : > { %s1835_s18 = smov (!%p391_p4, %s1831_s18), 0  ;;  %p374_p5 = scmp.lt.s32.totalorder %s1252_s21, 63  ;;  %456 = vst.msk [vmem:[#allocation2 + $0x60] sm:$0xff] (!%p1262_p11), %vm443_vm0, %v1546_v0  ;;  %457 = vst.msk [vmem:[#allocation2 + $0x68] sm:$0xff] (!%p1262_p11), %vm443_vm0, %v1546_v0 }
  0x31   : > { %s1254_s23 = sshll.u32 %s1835_s18, 4  ;;  %p411_p9 = scmp.gt.s32.totalorder %s1841_s20, 0  ;;  %458 = vst.msk [vmem:[#allocation2 + $0x70] sm:$0xff] (!%p1262_p11), %vm443_vm0, %v1546_v0  ;;  %459 = vst.msk [vmem:[#allocation2 + $0x78] sm:$0xff] (!%p1262_p11), %vm443_vm0, %v1546_v0 }
  0x32   : > { %p394_p6 = scmp.lt.s32.totalorder %s1254_s23, 63  ;;  %s1837_s21 = smov (!%p374_p5, %s1252_s21), 63 }
  0x33   : > { %s1253_s24 = sshll.u32 %s1837_s21, 3  ;;  %s1259_s13 = sshll.u32 %s1843_s22, 3 }
  0x34   : > { %s1839_s23 = smov (!%p394_p6, %s1254_s23), 63  ;;  %s1638_s27 = scalar_lea.vmem %s1812_s2, %s1253_s24 }
  0x35   : > { %s1255_s28 = sshll.u32 %s1839_s23, 2  ;;  %s1845_s20 = smov (!%p411_p9, %s1841_s20), 0 }
  0x36   : > { %s1643_s12 = scalar_lea.vmem %s1813_s3, %s1255_s28  ;;  %s1648_s16 = scalar_lea.vmem %s1815_s5, %s1259_s13 }
  0x37   : > { %s1653_s21 = scalar_lea.vmem %s1816_s6, %s1259_s13  ;;  %s1256_s23 = sshll.u32 %s1845_s20, 4 }
  0x38   : > { %p414_p10 = scmp.lt.s32.totalorder %s1256_s23, 63  ;;  %442 = sbr.rel (%p1262_p11) target bundleno = 63 (0x3f), region = 40 }
  0x3a   : > { %s1847_s23 = smov (!%p414_p10, %s1256_s23), 63 }
  0x3b   : > { %s1257_s24 = sshll.u32 %s1847_s23, 2 }
  0x3c   : > { %s1658_s26 = scalar_lea.vmem %s1814_s4, %s1257_s24 }
  0x3f PF: > { %s460_s20 = sld [smem:[#allocation4 + %s1530_s30]] }
  0x40   : > { %s462_s22 = sld [smem:[#allocation5 + %s1530_s30]] }
  0x45   : > { %s461_s28 = sadd.s32 %s1526_s1, %s460_s20 }
  0x46   : > { %p1263_p12 = scmp.gt.s32.totalorder %s461_s28, %s462_s22 }
  0x47   : > { %v469_v1 = vld [vmem:[%s1638_s27 + $0x10] sm:$0xff] (!%p1263_p12)  ;;  %s1264_s29 = sshll.u32 (!%p1263_p12), %s1530_s30, 7  ;;  %v467_v2 = vld [vmem:[%s1638_s27] sm:$0xff] (!%p1263_p12)  ;;  %v1547_v3 = vmov (!%p1263_p12), 0   ;;  %v470_v5 = vld [vmem:[%s1638_s27 + $0x18] sm:$0xff] (!%p1263_p12)  ;;  %v501_v51 = vlaneseq (!%p1263_p12)  ;;  %v1548_v57 = vmov (!%p1263_p12), 0.0  }
  0x48   : > { %466 = sbr.rel (%p1263_p12) target bundleno = 562 (0x232), region = 44  ;;  %1459 = vset.pattern.permute.xlu1 (!%p1263_p12), %v1547_v3  ;;  %1458 = vset.pattern.permute.xlu0 (!%p1263_p12), %v1547_v3  ;;  %v484_v4 = vstv (!%p1263_p12), %s1264_s29  ;;  %v468_v6 = vld [vmem:[%s1638_s27 + $0x8] sm:$0xff] (!%p1263_p12)  ;;  %v471_v12 = vld [vmem:[%s1638_s27 + $0x20] sm:$0xff] (!%p1263_p12)  ;;  %v474_v13 = vld [vmem:[%s1638_s27 + $0x38] sm:$0xff] (!%p1263_p12) }
  0x49   : > { %v487_v7 = vsub.s32 (!%p1263_p12), %v469_v1, %v484_v4  ;;  %v485_v8 = vsub.s32 (!%p1263_p12), %v467_v2, %v484_v4  ;;  %v488_v9 = vsub.s32 (!%p1263_p12), %v470_v5, %v484_v4  ;;  %v486_v10 = vsub.s32 (!%p1263_p12), %v468_v6, %v484_v4  ;;  %v472_v11 = vld [vmem:[%s1638_s27 + $0x28] sm:$0xff] (!%p1263_p12)  ;;  %v473_v14 = vld [vmem:[%s1638_s27 + $0x30] sm:$0xff] (!%p1263_p12)  ;;  %v475_v18 = vld [vmem:[%s1638_s27 + $0x40] sm:$0xff] (!%p1263_p12) }
  0x4a   : > { %v490_v15 = vsub.s32 (!%p1263_p12), %v472_v11, %v484_v4  ;;  %v489_v16 = vsub.s32 (!%p1263_p12), %v471_v12, %v484_v4  ;;  %v476_v17 = vld [vmem:[%s1638_s27 + $0x48] sm:$0xff] (!%p1263_p12)  ;;  %v492_v19 = vsub.s32 (!%p1263_p12), %v474_v13, %v484_v4  ;;  %v491_v20 = vsub.s32 (!%p1263_p12), %v473_v14, %v484_v4  ;;  %v478_v23 = vld [vmem:[%s1638_s27 + $0x58] sm:$0xff] (!%p1263_p12)  ;;  %v477_v24 = vld [vmem:[%s1638_s27 + $0x50] sm:$0xff] (!%p1263_p12) }
  0x4b   : > { %510 = vperm.xlu1 (!%p1263_p12), %1459, %v487_v7   ;;  %504 = vperm.xlu0 (!%p1263_p12), %1458, %v485_v8   ;;  %v494_v21 = vsub.s32 (!%p1263_p12), %v476_v17, %v484_v4  ;;  %v493_v22 = vsub.s32 (!%p1263_p12), %v475_v18, %v484_v4  ;;  %v496_v25 = vsub.s32 (!%p1263_p12), %v478_v23, %v484_v4  ;;  %v480_v27 = vld [vmem:[%s1638_s27 + $0x68] sm:$0xff] (!%p1263_p12)  ;;  %v479_v28 = vld [vmem:[%s1638_s27 + $0x60] sm:$0xff] (!%p1263_p12)  ;;  %v482_v31 = vld [vmem:[%s1638_s27 + $0x78] sm:$0xff] (!%p1263_p12)  ;;  %v1713_v52 = vand.u32 (!%p1263_p12), 127, %v501_v51 }
  0x4c   : > { %v495_v26 = vsub.s32 (!%p1263_p12), %v477_v24, %v484_v4  ;;  %v498_v29 = vsub.s32 (!%p1263_p12), %v480_v27, %v484_v4  ;;  %v497_v30 = vsub.s32 (!%p1263_p12), %v479_v28, %v484_v4  ;;  %v481_v32 = vld [vmem:[%s1638_s27 + $0x70] sm:$0xff] (!%p1263_p12)  ;;  %v500_v33 = vsub.s32 (!%p1263_p12), %v482_v31, %v484_v4  ;;  %v1460_v35 = vld [vmem:[%s1658_s26] sm:$0xff] (!%p1263_p12)   ;;  %v1462_v37 = vld [vmem:[%s1658_s26 + $0x8] sm:$0xff] (!%p1263_p12)  }
  0x4d   : > { %v499_v34 = vsub.s32 (!%p1263_p12), %v481_v32, %v484_v4  ;;  %v1461_v36 = vld [vmem:[%s1643_s12] sm:$0xff] (!%p1263_p12)   ;;  %v1463_v38 = vld [vmem:[%s1643_s12 + $0x8] sm:$0xff] (!%p1263_p12)   ;;  %1332 = vmatprep.subr.bf16.mxu1 (!%p1263_p12), %v1460_v35  ;;  %v1464_v39 = vld [vmem:[%s1658_s26 + $0x10] sm:$0xff] (!%p1263_p12)  }
  0x4e   : > { %1364 = vmatprep.subr.bf16.mxu0 (!%p1263_p12), %v1461_v36  ;;  %1333 = vmatpush3.bf16.msra.mxu1 (!%p1263_p12), %v1460_v35  ;;  %v1465_v40 = vld [vmem:[%s1643_s12 + $0x10] sm:$0xff] (!%p1263_p12)   ;;  %v1466_v41 = vld [vmem:[%s1658_s26 + $0x18] sm:$0xff] (!%p1263_p12)   ;;  %v1468_v43 = vld [vmem:[%s1658_s26 + $0x20] sm:$0xff] (!%p1263_p12)  }
  0x4f   : > { %513 = vperm.xlu1 %1459, %v488_v9   ;;  %507 = vperm.xlu0 %1458, %v486_v10   ;;  %v1467_v42 = vld [vmem:[%s1643_s12 + $0x18] sm:$0xff]   ;;  %v1469_v44 = vld [vmem:[%s1643_s12 + $0x20] sm:$0xff]   ;;  %v1470_v45 = vld [vmem:[%s1658_s26 + $0x28] sm:$0xff]  }
  0x50   : > { %1365 = vmatpush3.bf16.msra.mxu0 %v1461_v36  ;;  %1334 = vmatprep.subr.bf16.mxu1 %v1462_v37  ;;  %v1471_v46 = vld [vmem:[%s1643_s12 + $0x28] sm:$0xff]   ;;  %v1472_v47 = vld [vmem:[%s1658_s26 + $0x30] sm:$0xff]   ;;  %v1474_v49 = vld [vmem:[%s1658_s26 + $0x38] sm:$0xff]  }
  0x51   : > { %1366 = vmatprep.subr.bf16.mxu0 %v1463_v38  ;;  %v1473_v48 = vld [vmem:[%s1643_s12 + $0x30] sm:$0xff]   ;;  %v1475_v50 = vld [vmem:[%s1643_s12 + $0x38] sm:$0xff]  }
  0x52   : > { %1335 = vmatpush3.bf16.msra.mxu1 %v1462_v37 }
  0x53   : > { %519 = vperm.xlu1 %1459, %v490_v15   ;;  %516 = vperm.xlu0 %1458, %v489_v16  }
  0x54   : > { %1367 = vmatpush3.bf16.msra.mxu0 %v1463_v38  ;;  %1336 = vmatprep.subr.bf16.mxu1 %v1464_v39 }
  0x55   : > { %1368 = vmatprep.subr.bf16.mxu0 %v1465_v40 }
  0x56   : > { %1337 = vmatpush3.bf16.msra.mxu1 %v1464_v39 }
  0x57   : > { %525 = vperm.xlu1 %1459, %v492_v19   ;;  %522 = vperm.xlu0 %1458, %v491_v20  }
  0x58   : > { %1369 = vmatpush3.bf16.msra.mxu0 %v1465_v40  ;;  %1338 = vmatprep.subr.bf16.mxu1 %v1466_v41  ;;  %v947_v40 = vld [vmem:[#allocation2 + $0x10] sm:$0xff] }
  0x59   : > { %1370 = vmatprep.subr.bf16.mxu0 %v1467_v42 }
  0x5a   : > { %1339 = vmatpush3.bf16.msra.mxu1 %v1466_v41 }
  0x5b   : > { %531 = vperm.xlu1 %1459, %v494_v21   ;;  %528 = vperm.xlu0 %1458, %v493_v22  }
  0x5c   : > { %1371 = vmatpush3.bf16.msra.mxu0 %v1467_v42  ;;  %1340 = vmatprep.subr.bf16.mxu1 %v1468_v43 }
  0x5d   : > { %1372 = vmatprep.subr.bf16.mxu0 %v1469_v44 }
  0x5e   : > { %1341 = vmatpush3.bf16.msra.mxu1 %v1468_v43 }
  0x5f   : > { %537 = vperm.xlu1 %1459, %v496_v25   ;;  %534 = vperm.xlu0 %1458, %v495_v26  }
  0x60   : > { %1373 = vmatpush3.bf16.msra.mxu0 %v1469_v44  ;;  %1342 = vmatprep.subr.bf16.mxu1 %v1470_v45  ;;  %v945_v44 = vld [vmem:[#allocation2] sm:$0xff] }
  0x61   : > { %1374 = vmatprep.subr.bf16.mxu0 %v1471_v46 }
  0x62   : > { %1343 = vmatpush3.bf16.msra.mxu1 %v1470_v45 }
  0x63   : > { %543 = vperm.xlu1 %1459, %v498_v29   ;;  %540 = vperm.xlu0 %1458, %v497_v30  }
  0x64   : > { %1375 = vmatpush3.bf16.msra.mxu0 %v1471_v46  ;;  %1344 = vmatprep.subr.bf16.mxu1 %v1472_v47 }
  0x65   : > { %1376 = vmatprep.subr.bf16.mxu0 %v1473_v48 }
  0x66   : > { %1345 = vmatpush3.bf16.msra.mxu1 %v1472_v47 }
  0x67   : > { %549 = vperm.xlu1 %1459, %v500_v33   ;;  %546 = vperm.xlu0 %1458, %v499_v34  }
  0x68   : > { %1377 = vmatpush3.bf16.msra.mxu0 %v1473_v48  ;;  %1346 = vmatprep.subr.bf16.mxu1 %v1474_v49  ;;  %v948_v48 = vld [vmem:[#allocation2 + $0x18] sm:$0xff] }
  0x69   : > { %1378 = vmatprep.subr.bf16.mxu0 %v1475_v50 }
  0x6a   : > { %1347 = vmatpush3.bf16.msra.mxu1 %v1474_v49 }
  0x6c   : > { %1379 = vmatpush3.bf16.msra.mxu0 %v1475_v50 }
  0xca   : > { %v511_v53 = vpop.permute.xlu1 %510  ;;  %v505_v54 = vpop.permute.xlu0 %504 }
  0xcb   : > { %vm551_vm1 = vcmp.eq.s32.totalorder %v505_v54, %v1713_v52  ;;  %vm553_vm2 = vcmp.eq.s32.totalorder %v511_v53, %v1713_v52  ;;  %v946_v53 = vld [vmem:[#allocation2 + $0x8] sm:$0xff] }
  0xcc   : > { %v1265_v58 = vsel %vm551_vm1, 1.0, %v1548_v57  ;;  %v1267_v61 = vsel %vm553_vm2, 1.0, %v1548_v57  ;;  %vm977_vm1 = vcmask 261120  }
  0xce   : > { %v514_v55 = vpop.permute.xlu1 %513  ;;  %v508_v56 = vpop.permute.xlu0 %507 }
  0xcf   : > { %vm554_vm3 = vcmp.eq.s32.totalorder %v514_v55, %v1713_v52  ;;  %vm552_vm4 = vcmp.eq.s32.totalorder %v508_v56, %v1713_v52 }
  0xd0   : > { %v1266_v59 = vsel %vm552_vm4, 1.0, %v1548_v57  ;;  %v1268_v62 = vsel %vm554_vm3, 1.0, %v1548_v57 }
  0xd1   : > { %v599_v60 = vpack.c.bf16 %v1266_v59, %v1265_v58  ;;  %v600_v1 = vpack.c.bf16 %v1268_v62, %v1267_v61 }
  0xd2   : > { %v520_v63 = vpop.permute.xlu1 %519  ;;  %v517_v0 = vpop.permute.xlu0 %516 }
  0xd3   : > { %vm556_vm5 = vcmp.eq.s32.totalorder %v520_v63, %v1713_v52  ;;  %vm555_vm6 = vcmp.eq.s32.totalorder %v517_v0, %v1713_v52  ;;  %639 = vxpose.xlu0.c.b16.start [1/8] %v599_v60, 128  ;;  %v951_v60 = vld [vmem:[#allocation2 + $0x30] sm:$0xff]  ;;  %v949_v0 = vld [vmem:[#allocation2 + $0x20] sm:$0xff] }
  0xd4   : > { %v1270_v2 = vsel %vm556_vm5, 1.0, %v1548_v57  ;;  %v1269_v3 = vsel %vm555_vm6, 1.0, %v1548_v57 }
  0xd5   : > { %v601_v6 = vpack.c.bf16 %v1270_v2, %v1269_v3 }
  0xd6   : > { %v526_v4 = vpop.permute.xlu1 %525  ;;  %v523_v5 = vpop.permute.xlu0 %522 }
  0xd7   : > { %vm558_vm7 = vcmp.eq.s32.totalorder %v526_v4, %v1713_v52  ;;  %vm557_vm8 = vcmp.eq.s32.totalorder %v523_v5, %v1713_v52  ;;  %640 = vxpose.xlu0.c.b16.cont [2/8] %v600_v1, 128  ;;  %v952_v4 = vld [vmem:[#allocation2 + $0x38] sm:$0xff] }
  0xd8   : > { %v1272_v7 = vsel %vm558_vm7, 1.0, %v1548_v57  ;;  %v1271_v8 = vsel %vm557_vm8, 1.0, %v1548_v57 }
  0xd9   : > { %v602_v11 = vpack.c.bf16 %v1272_v7, %v1271_v8 }
  0xda   : > { %v532_v9 = vpop.permute.xlu1 %531  ;;  %v529_v10 = vpop.permute.xlu0 %528 }
  0xdb   : > { %vm560_vm9 = vcmp.eq.s32.totalorder %v532_v9, %v1713_v52  ;;  %vm559_vm10 = vcmp.eq.s32.totalorder %v529_v10, %v1713_v52  ;;  %641 = vxpose.xlu0.c.b16.cont [3/8] %v601_v6, 128  ;;  %v950_v9 = vld [vmem:[#allocation2 + $0x28] sm:$0xff] }
  0xdc   : > { %v1274_v12 = vsel %vm560_vm9, 1.0, %v1548_v57  ;;  %v1273_v13 = vsel %vm559_vm10, 1.0, %v1548_v57 }
  0xdd   : > { %v603_v16 = vpack.c.bf16 %v1274_v12, %v1273_v13 }
  0xde   : > { %v538_v14 = vpop.permute.xlu1 %537  ;;  %v535_v15 = vpop.permute.xlu0 %534 }
  0xdf   : > { %vm562_vm11 = vcmp.eq.s32.totalorder %v538_v14, %v1713_v52  ;;  %vm561_vm12 = vcmp.eq.s32.totalorder %v535_v15, %v1713_v52  ;;  %642 = vxpose.xlu0.c.b16.cont [4/8] %v602_v11, 128 }
  0xe0   : > { %v1276_v17 = vsel %vm562_vm11, 1.0, %v1548_v57  ;;  %v1275_v18 = vsel %vm561_vm12, 1.0, %v1548_v57 }
  0xe1   : > { %v604_v21 = vpack.c.bf16 %v1276_v17, %v1275_v18 }
  0xe2   : > { %v544_v19 = vpop.permute.xlu1 %543  ;;  %v541_v20 = vpop.permute.xlu0 %540 }
  0xe3   : > { %vm564_vm13 = vcmp.eq.s32.totalorder %v544_v19, %v1713_v52  ;;  %vm563_vm14 = vcmp.eq.s32.totalorder %v541_v20, %v1713_v52  ;;  %643 = vxpose.xlu0.c.b16.cont [5/8] %v603_v16, 128  ;;  %v955_v16 = vld [vmem:[#allocation2 + $0x50] sm:$0xff]  ;;  %v953_v20 = vld [vmem:[#allocation2 + $0x40] sm:$0xff] }
  0xe4   : > { %v1278_v22 = vsel %vm564_vm13, 1.0, %v1548_v57  ;;  %v1277_v23 = vsel %vm563_vm14, 1.0, %v1548_v57 }
  0xe5   : > { %v605_v26 = vpack.c.bf16 %v1278_v22, %v1277_v23 }
  0xe6   : > { %v550_v24 = vpop.permute.xlu1 %549  ;;  %v547_v25 = vpop.permute.xlu0 %546 }
  0xe7   : > { %vm566_vm15 = vcmp.eq.s32.totalorder %v550_v24, %v1713_v52  ;;  %vm565_vm0 = vcmp.eq.s32.totalorder %v547_v25, %v1713_v52  ;;  %644 = vxpose.xlu0.c.b16.cont [6/8] %v604_v21, 128  ;;  %v956_v24 = vld [vmem:[#allocation2 + $0x58] sm:$0xff] }
  0xe8   : > { %v1280_v27 = vsel %vm566_vm15, 1.0, %v1548_v57  ;;  %v1279_v28 = vsel %vm565_vm0, 1.0, %v1548_v57 }
  0xe9   : > { %v606_v29 = vpack.c.bf16 %v1280_v27, %v1279_v28 }
  0xeb   : > { %645 = vxpose.xlu0.c.b16.cont [7/8] %v605_v26, 128 }
  0xef   : > { %646 = vxpose.xlu0.c.b16.end [8/8] %v606_v29, 128  ;;  %v954_v29 = vld [vmem:[#allocation2 + $0x48] sm:$0xff] }
 0x139   : > { %v647_v30 = vpop.trf.xlu0 }
 0x13a   : > { %1348 = vmatprep.mubr.bf16.mxu1 %v647_v30  ;;  %1380 = vmatprep.mubr.bf16.mxu0 %v647_v30 }
 0x13d   : > { %v648_v31 = vpop.trf.xlu0 }
 0x13e   : > { %1349 = vmatmul.mubr.bf16.vlgmr.msra.gmra.mrb[0].mxu1 %v648_v31  ;;  %1381 = vmatmul.mubr.bf16.vlgmr.msra.gmra.mrb[0].mxu0 %v648_v31 }
 0x141   : > { %v649_v32 = vpop.trf.xlu0 }
 0x142   : > { %1352 = vmatprep.mubr.bf16.mxu1 %v649_v32  ;;  %1384 = vmatprep.mubr.bf16.mxu0 %v649_v32 }
 0x145   : > { %v650_v33 = vpop.trf.xlu0 }
 0x146   : > { %1353 = vmatmul.mubr.bf16.gmra.mrb[4].mxu1 %v650_v33  ;;  %1385 = vmatmul.mubr.bf16.gmra.mrb[4].mxu0 %v650_v33 }
 0x149   : > { %v651_v34 = vpop.trf.xlu0 }
 0x14a   : > { %1356 = vmatprep.mubr.bf16.mxu1 %v651_v34  ;;  %1388 = vmatprep.mubr.bf16.mxu0 %v651_v34 }
 0x14d   : > { %v652_v35 = vpop.trf.xlu0 }
 0x14e   : > { %1357 = vmatmul.mubr.bf16.gmra.mrb[8].mxu1 %v652_v35  ;;  %1389 = vmatmul.mubr.bf16.gmra.mrb[8].mxu0 %v652_v35 }
 0x151   : > { %v653_v36 = vpop.trf.xlu0 }
 0x152   : > { %1360 = vmatprep.mubr.bf16.mxu1 %v653_v36  ;;  %1392 = vmatprep.mubr.bf16.mxu0 %v653_v36  ;;  %v959_v36 = vld [vmem:[#allocation2 + $0x70] sm:$0xff] }
 0x155   : > { %v654_v37 = vpop.trf.xlu0 }
 0x156   : > { %1361 = vmatmul.mubr.bf16.gmra.mrb[12].mxu1 %v654_v37  ;;  %1393 = vmatmul.mubr.bf16.gmra.mrb[12].mxu0 %v654_v37 }
 0x211   : > { %v1350_v38 = vpop.f32.mrb[0].mxu1  ;;  %v1382_v39 = vpop.f32.mrb[0].mxu0 }
 0x212   : > { %v891_v41 = vadd.f32 %v1382_v39, %v1350_v38  ;;  %v737_v42 = vpop.f32.mrb[1].mxu1  ;;  %v882_v43 = vpop.f32.mrb[1].mxu0 }
 0x213   : > { %v883_v45 = vadd.f32 %v882_v43, %v737_v42  ;;  %v1351_v46 = vpop.f32.mrb[2].mxu1  ;;  %v1383_v47 = vpop.f32.mrb[2].mxu0 }
 0x214   : > { %v963_v49 = vadd.f32 %v947_v40, %v891_v41  ;;  %v894_v50 = vadd.f32 %v1383_v47, %v1351_v46  ;;  %v740_v51 = vpop.f32.mrb[3].mxu1  ;;  %v885_v52 = vpop.f32.mrb[3].mxu0  ;;  %v957_v40 = vld [vmem:[#allocation2 + $0x60] sm:$0xff] }
 0x215   : > { %v961_v54 = vadd.f32 %v945_v44, %v883_v45  ;;  %v886_v55 = vadd.f32 %v885_v52, %v740_v51  ;;  %v960_v44 = vld [vmem:[#allocation2 + $0x78] sm:$0xff] }
 0x216   : > { %980 = vst.msk [vmem:[#allocation2 + $0x10] sm:$0xff] %vm977_vm1, %v963_v49  ;;  %v964_v56 = vadd.f32 %v948_v48, %v894_v50  ;;  %v958_v49 = vld [vmem:[#allocation2 + $0x68] sm:$0xff] }
 0x217   : > { %978 = vst.msk [vmem:[#allocation2] sm:$0xff] %vm977_vm1, %v961_v54  ;;  %v962_v57 = vadd.f32 %v946_v53, %v886_v55 }
 0x218   : > { %981 = vst.msk [vmem:[#allocation2 + $0x18] sm:$0xff] %vm977_vm1, %v964_v56 }
 0x219   : > { %979 = vst.msk [vmem:[#allocation2 + $0x8] sm:$0xff] %vm977_vm1, %v962_v57  ;;  %v1354_v58 = vpop.f32.mrb[4].mxu1  ;;  %v1386_v59 = vpop.f32.mrb[4].mxu0 }
 0x21a   : > { %v907_v61 = vadd.f32 %v1386_v59, %v1354_v58  ;;  %v753_v62 = vpop.f32.mrb[5].mxu1  ;;  %v898_v63 = vpop.f32.mrb[5].mxu0 }
 0x21b   : > { %v899_v1 = vadd.f32 %v898_v63, %v753_v62  ;;  %v1355_v2 = vpop.f32.mrb[6].mxu1  ;;  %v1387_v3 = vpop.f32.mrb[6].mxu0 }
 0x21c   : > { %v967_v5 = vadd.f32 %v951_v60, %v907_v61  ;;  %v910_v6 = vadd.f32 %v1387_v3, %v1355_v2  ;;  %v756_v7 = vpop.f32.mrb[7].mxu1  ;;  %v901_v8 = vpop.f32.mrb[7].mxu0 }
 0x21d   : > { %v965_v10 = vadd.f32 %v949_v0, %v899_v1  ;;  %v902_v11 = vadd.f32 %v901_v8, %v756_v7 }
 0x21e   : > { %984 = vst.msk [vmem:[#allocation2 + $0x30] sm:$0xff] %vm977_vm1, %v967_v5  ;;  %v968_v12 = vadd.f32 %v952_v4, %v910_v6 }
 0x21f   : > { %982 = vst.msk [vmem:[#allocation2 + $0x20] sm:$0xff] %vm977_vm1, %v965_v10  ;;  %v966_v13 = vadd.f32 %v950_v9, %v902_v11 }
 0x220   : > { %985 = vst.msk [vmem:[#allocation2 + $0x38] sm:$0xff] %vm977_vm1, %v968_v12 }
 0x221   : > { %983 = vst.msk [vmem:[#allocation2 + $0x28] sm:$0xff] %vm977_vm1, %v966_v13  ;;  %v1358_v14 = vpop.f32.mrb[8].mxu1  ;;  %v1390_v15 = vpop.f32.mrb[8].mxu0 }
 0x222   : > { %v923_v17 = vadd.f32 %v1390_v15, %v1358_v14  ;;  %v769_v18 = vpop.f32.mrb[9].mxu1  ;;  %v914_v19 = vpop.f32.mrb[9].mxu0 }
 0x223   : > { %v915_v21 = vadd.f32 %v914_v19, %v769_v18  ;;  %v1359_v22 = vpop.f32.mrb[10].mxu1  ;;  %v1391_v23 = vpop.f32.mrb[10].mxu0 }
 0x224   : > { %v971_v25 = vadd.f32 %v955_v16, %v923_v17  ;;  %v926_v26 = vadd.f32 %v1391_v23, %v1359_v22  ;;  %v772_v27 = vpop.f32.mrb[11].mxu1  ;;  %v917_v28 = vpop.f32.mrb[11].mxu0 }
 0x225   : > { %v969_v30 = vadd.f32 %v953_v20, %v915_v21  ;;  %v918_v31 = vadd.f32 %v917_v28, %v772_v27 }
 0x226   : > { %988 = vst.msk [vmem:[#allocation2 + $0x50] sm:$0xff] %vm977_vm1, %v971_v25  ;;  %v972_v32 = vadd.f32 %v956_v24, %v926_v26 }
 0x227   : > { %986 = vst.msk [vmem:[#allocation2 + $0x40] sm:$0xff] %vm977_vm1, %v969_v30  ;;  %v970_v33 = vadd.f32 %v954_v29, %v918_v31 }
 0x228   : > { %989 = vst.msk [vmem:[#allocation2 + $0x58] sm:$0xff] %vm977_vm1, %v972_v32 }
 0x229   : > { %987 = vst.msk [vmem:[#allocation2 + $0x48] sm:$0xff] %vm977_vm1, %v970_v33  ;;  %v1362_v34 = vpop.f32.mrb[12].mxu1  ;;  %v1394_v35 = vpop.f32.mrb[12].mxu0 }
 0x22a   : > { %v939_v37 = vadd.f32 %v1394_v35, %v1362_v34  ;;  %v785_v38 = vpop.f32.mrb[13].mxu1  ;;  %v930_v39 = vpop.f32.mrb[13].mxu0 }
 0x22b   : > { %v931_v41 = vadd.f32 %v930_v39, %v785_v38  ;;  %v1363_v42 = vpop.f32.mrb[14].mxu1  ;;  %v1395_v43 = vpop.f32.mrb[14].mxu0 }
 0x22c   : > { %v975_v45 = vadd.f32 %v959_v36, %v939_v37  ;;  %v942_v46 = vadd.f32 %v1395_v43, %v1363_v42  ;;  %v788_v47 = vpop.f32.mrb[15].mxu1  ;;  %v933_v48 = vpop.f32.mrb[15].mxu0 }
 0x22d   : > { %v973_v50 = vadd.f32 %v957_v40, %v931_v41  ;;  %v934_v51 = vadd.f32 %v933_v48, %v788_v47 }
 0x22e   : > { %992 = vst.msk [vmem:[#allocation2 + $0x70] sm:$0xff] %vm977_vm1, %v975_v45  ;;  %v976_v52 = vadd.f32 %v960_v44, %v942_v46 }
 0x22f   : > { %990 = vst.msk [vmem:[#allocation2 + $0x60] sm:$0xff] %vm977_vm1, %v973_v50  ;;  %v974_v53 = vadd.f32 %v958_v49, %v934_v51 }
 0x230   : > { %993 = vst.msk [vmem:[#allocation2 + $0x78] sm:$0xff] %vm977_vm1, %v976_v52 }
 0x231   : > { %991 = vst.msk [vmem:[#allocation2 + $0x68] sm:$0xff] %vm977_vm1, %v974_v53 }
 0x232 PF: > { %p1297_p13 = scmp.ne.s32.totalorder %s1526_s1, 1 }
 0x233   : > { %v1016_v54 = vld [vmem:[%s1648_s16 + $0x10] sm:$0xff] (!%p1297_p13)  ;;  %v1014_v55 = vld [vmem:[%s1648_s16] sm:$0xff] (!%p1297_p13)  ;;  %v1549_v56 = vmov (!%p1297_p13), 0   ;;  %v1017_v57 = vld [vmem:[%s1648_s16 + $0x18] sm:$0xff] (!%p1297_p13)  ;;  %vm1126_vm2 = vcmask (!%p1297_p13), 261120  }
 0x234   : > { %997 = sbr.rel (%p1297_p13) target bundleno = 724 (0x2d4), region = 48  ;;  %1477 = vset.pattern.permute.xlu1 (!%p1297_p13), %v1549_v56  ;;  %1476 = vset.pattern.permute.xlu0 (!%p1297_p13), %v1549_v56  ;;  %v1015_v58 = vld [vmem:[%s1648_s16 + $0x8] sm:$0xff] (!%p1297_p13)  ;;  %v1018_v60 = vld [vmem:[%s1648_s16 + $0x20] sm:$0xff] (!%p1297_p13)  ;;  %v1021_v61 = vld [vmem:[%s1648_s16 + $0x38] sm:$0xff] (!%p1297_p13) }
 0x235   : > { %1042 = vperm.xlu1 (!%p1297_p13), %1477, %v1016_v54   ;;  %1032 = vperm.xlu0 (!%p1297_p13), %1476, %v1014_v55   ;;  %v1019_v59 = vld [vmem:[%s1648_s16 + $0x28] sm:$0xff] (!%p1297_p13)  ;;  %v1020_v62 = vld [vmem:[%s1648_s16 + $0x30] sm:$0xff] (!%p1297_p13)  ;;  %v1022_v0 = vld [vmem:[%s1648_s16 + $0x40] sm:$0xff] (!%p1297_p13) }
 0x236   : > { %v1023_v63 = vld [vmem:[%s1648_s16 + $0x48] sm:$0xff] (!%p1297_p13)  ;;  %v1025_v1 = vld [vmem:[%s1648_s16 + $0x58] sm:$0xff] (!%p1297_p13)  ;;  %v1024_v2 = vld [vmem:[%s1648_s16 + $0x50] sm:$0xff] (!%p1297_p13) }
 0x237   : > { %v1027_v3 = vld [vmem:[%s1648_s16 + $0x68] sm:$0xff] (!%p1297_p13)  ;;  %v1026_v4 = vld [vmem:[%s1648_s16 + $0x60] sm:$0xff] (!%p1297_p13)  ;;  %v1029_v5 = vld [vmem:[%s1648_s16 + $0x78] sm:$0xff] (!%p1297_p13) }
 0x238   : > { %v1028_v6 = vld [vmem:[%s1648_s16 + $0x70] sm:$0xff] (!%p1297_p13)  ;;  %v998_v8 = vld [vmem:[#allocation2] sm:$0xff] (!%p1297_p13)  ;;  %v1001_v13 = vld [vmem:[#allocation2 + $0x18] sm:$0xff] (!%p1297_p13) }
 0x239   : > { %1047 = vperm.xlu1 (!%p1297_p13), %1477, %v1017_v57   ;;  %1037 = vperm.xlu0 (!%p1297_p13), %1476, %v1015_v58   ;;  %v1000_v7 = vld [vmem:[#allocation2 + $0x10] sm:$0xff] (!%p1297_p13)  ;;  %v999_v14 = vld [vmem:[#allocation2 + $0x8] sm:$0xff] (!%p1297_p13)  ;;  %v1002_v20 = vld [vmem:[#allocation2 + $0x20] sm:$0xff] (!%p1297_p13) }
 0x23a   : > { %v1003_v19 = vld [vmem:[#allocation2 + $0x28] sm:$0xff] (!%p1297_p13)  ;;  %v1005_v25 = vld [vmem:[#allocation2 + $0x38] sm:$0xff] (!%p1297_p13)  ;;  %v1004_v26 = vld [vmem:[#allocation2 + $0x30] sm:$0xff] (!%p1297_p13) }
 0x23b   : > { %v1007_v31 = vld [vmem:[#allocation2 + $0x48] sm:$0xff]  ;;  %v1006_v32 = vld [vmem:[#allocation2 + $0x40] sm:$0xff]  ;;  %v1009_v37 = vld [vmem:[#allocation2 + $0x58] sm:$0xff] }
 0x23c   : > { %v1008_v38 = vld [vmem:[#allocation2 + $0x50] sm:$0xff]  ;;  %v1011_v43 = vld [vmem:[#allocation2 + $0x68] sm:$0xff]  ;;  %v1010_v44 = vld [vmem:[#allocation2 + $0x60] sm:$0xff] }
 0x23d   : > { %1057 = vperm.xlu1 %1477, %v1019_v59   ;;  %1052 = vperm.xlu0 %1476, %v1018_v60   ;;  %v1013_v49 = vld [vmem:[#allocation2 + $0x78] sm:$0xff]  ;;  %v1012_v50 = vld [vmem:[#allocation2 + $0x70] sm:$0xff] }
 0x241   : > { %1067 = vperm.xlu1 %1477, %v1021_v61   ;;  %1062 = vperm.xlu0 %1476, %v1020_v62  }
 0x245   : > { %1077 = vperm.xlu1 %1477, %v1023_v63   ;;  %1072 = vperm.xlu0 %1476, %v1022_v0  }
 0x249   : > { %1087 = vperm.xlu1 %1477, %v1025_v1   ;;  %1082 = vperm.xlu0 %1476, %v1024_v2  }
 0x24d   : > { %1097 = vperm.xlu1 %1477, %v1027_v3   ;;  %1092 = vperm.xlu0 %1476, %v1026_v4  }
 0x251   : > { %1107 = vperm.xlu1 %1477, %v1029_v5   ;;  %1102 = vperm.xlu0 %1476, %v1028_v6  }
 0x2b4   : > { %v1043_v9 = vpop.permute.xlu1 %1042  ;;  %v1033_v10 = vpop.permute.xlu0 %1032 }
 0x2b5   : > { %v1112_v11 = vmul.f32 %v1043_v9, %v1000_v7  ;;  %v1110_v12 = vmul.f32 %v1033_v10, %v998_v8 }
 0x2b7   : > { %1129 = vst.msk [vmem:[%s1653_s21 + $0x10] sm:$0xff] %vm1126_vm2, %v1112_v11  ;;  %1127 = vst.msk [vmem:[%s1653_s21] sm:$0xff] %vm1126_vm2, %v1110_v12 }
 0x2b8   : > { %v1048_v15 = vpop.permute.xlu1 %1047  ;;  %v1038_v16 = vpop.permute.xlu0 %1037 }
 0x2b9   : > { %v1113_v17 = vmul.f32 %v1048_v15, %v1001_v13  ;;  %v1111_v18 = vmul.f32 %v1038_v16, %v999_v14 }
 0x2bb   : > { %1130 = vst.msk [vmem:[%s1653_s21 + $0x18] sm:$0xff] %vm1126_vm2, %v1113_v17  ;;  %1128 = vst.msk [vmem:[%s1653_s21 + $0x8] sm:$0xff] %vm1126_vm2, %v1111_v18 }
 0x2bc   : > { %v1058_v21 = vpop.permute.xlu1 %1057  ;;  %v1053_v22 = vpop.permute.xlu0 %1052 }
 0x2bd   : > { %v1115_v23 = vmul.f32 %v1058_v21, %v1003_v19  ;;  %v1114_v24 = vmul.f32 %v1053_v22, %v1002_v20 }
 0x2bf   : > { %1132 = vst.msk [vmem:[%s1653_s21 + $0x28] sm:$0xff] %vm1126_vm2, %v1115_v23  ;;  %1131 = vst.msk [vmem:[%s1653_s21 + $0x20] sm:$0xff] %vm1126_vm2, %v1114_v24 }
 0x2c0   : > { %v1068_v27 = vpop.permute.xlu1 %1067  ;;  %v1063_v28 = vpop.permute.xlu0 %1062 }
 0x2c1   : > { %v1117_v29 = vmul.f32 %v1068_v27, %v1005_v25  ;;  %v1116_v30 = vmul.f32 %v1063_v28, %v1004_v26 }
 0x2c3   : > { %1134 = vst.msk [vmem:[%s1653_s21 + $0x38] sm:$0xff] %vm1126_vm2, %v1117_v29  ;;  %1133 = vst.msk [vmem:[%s1653_s21 + $0x30] sm:$0xff] %vm1126_vm2, %v1116_v30 }
 0x2c4   : > { %v1078_v33 = vpop.permute.xlu1 %1077  ;;  %v1073_v34 = vpop.permute.xlu0 %1072 }
 0x2c5   : > { %v1119_v35 = vmul.f32 %v1078_v33, %v1007_v31  ;;  %v1118_v36 = vmul.f32 %v1073_v34, %v1006_v32 }
 0x2c7   : > { %1136 = vst.msk [vmem:[%s1653_s21 + $0x48] sm:$0xff] %vm1126_vm2, %v1119_v35  ;;  %1135 = vst.msk [vmem:[%s1653_s21 + $0x40] sm:$0xff] %vm1126_vm2, %v1118_v36 }
 0x2c8   : > { %v1088_v39 = vpop.permute.xlu1 %1087  ;;  %v1083_v40 = vpop.permute.xlu0 %1082 }
 0x2c9   : > { %v1121_v41 = vmul.f32 %v1088_v39, %v1009_v37  ;;  %v1120_v42 = vmul.f32 %v1083_v40, %v1008_v38 }
 0x2cb   : > { %1138 = vst.msk [vmem:[%s1653_s21 + $0x58] sm:$0xff] %vm1126_vm2, %v1121_v41  ;;  %1137 = vst.msk [vmem:[%s1653_s21 + $0x50] sm:$0xff] %vm1126_vm2, %v1120_v42 }
 0x2cc   : > { %v1098_v45 = vpop.permute.xlu1 %1097  ;;  %v1093_v46 = vpop.permute.xlu0 %1092 }
 0x2cd   : > { %v1123_v47 = vmul.f32 %v1098_v45, %v1011_v43  ;;  %v1122_v48 = vmul.f32 %v1093_v46, %v1010_v44 }
 0x2cf   : > { %1140 = vst.msk [vmem:[%s1653_s21 + $0x68] sm:$0xff] %vm1126_vm2, %v1123_v47  ;;  %1139 = vst.msk [vmem:[%s1653_s21 + $0x60] sm:$0xff] %vm1126_vm2, %v1122_v48 }
 0x2d0   : > { %v1108_v51 = vpop.permute.xlu1 %1107  ;;  %v1103_v52 = vpop.permute.xlu0 %1102 }
 0x2d1   : > { %v1125_v53 = vmul.f32 %v1108_v51, %v1013_v49  ;;  %v1124_v54 = vmul.f32 %v1103_v52, %v1012_v50 }
 0x2d3   : > { %1142 = vst.msk [vmem:[%s1653_s21 + $0x78] sm:$0xff] %vm1126_vm2, %v1125_v53  ;;  %1141 = vst.msk [vmem:[%s1653_s21 + $0x70] sm:$0xff] %vm1126_vm2, %v1124_v54 }
 0x2d4 PF: > { %s26_s9 = sadd.s32 1, %s1542_s9   ;;  %s1818_s1 = smov %s1534_s7 }
 0x2d5   : > { %p23_p0 = scmp.ge.s32.totalorder %s26_s9, 10   ;;  %s1819_s30 = smov %s1538_s8 }
 0x2d6   : > { %s1820_s7 = smov %s1823_s10  ;;  %s1821_s8 = smov %s1827_s11 }
 0x2d7   :  { %25 = sbr.rel (!%p23_p0) target bundleno = 28 (0x1c), region = 87 }

</bundles_post_ra>
